<compile_context>
chip_gen: v7x
topology: tpu7x:2x2x1
jax: 0.10.0
libtpu: 0.0.40
codegen_flags: <defaults>
</compile_context>

<pallas_src>
import jax
import jax.numpy as jnp
from jax import lax
from jax.experimental import pallas as pl
from jax.experimental.pallas import tpu as pltpu


def _round_up(x, m):
    return ((x + m - 1) // m) * m


def _bilinear_sim_kernel(src_ref, tgt_ref, wt_ref, out_ref, src_lin_ref):
    # src_ref: (TM, H), tgt_ref: (TN, H), wt_ref: (H, H) == W.T (in, out) layout,
    # out_ref: (TM, TN), src_lin_ref: (TM, H) VMEM scratch reused across the
    # tgt-tile grid axis.

    @pl.when(pl.program_id(2) == 0)
    def _():
        # src_ = src @ W.T ; W was pre-transposed in the wrapper so this is a
        # standard (M,K)x(K,N) contraction -- feeds the MXU with no in-kernel
        # transpose.  f32 accumulation.
        src_lin = lax.dot_general(
            src_ref[...], wt_ref[...],
            dimension_numbers=(((1,), (0,)), ((), ())),
            preferred_element_type=jnp.float32,
        )
        src_lin_ref[...] = src_lin.astype(src_lin_ref.dtype)

    # out = src_ @ tgt.T : NT contraction of the last dims (MXU-native, no
    # materialized transpose of the tgt tile).
    out = lax.dot_general(
        src_lin_ref[...], tgt_ref[...],
        dimension_numbers=(((1,), (1,)), ((), ())),
        preferred_element_type=jnp.float32,
    )
    out_ref[...] = out.astype(out_ref.dtype)


def _vmem_capacity_bytes():
    """Per-TensorCore VMEM capacity; conservative 64 MiB (v7x) fallback."""
    try:
        info = pltpu.get_tpu_info()
        cap = getattr(info, "vmem_capacity_bytes", None)
        if cap:
            return int(cap)
    except Exception:
        pass
    return 64 << 20


def bilinear_sim(src, tgt, weight, *, tm=1024, tn=256, compute_in_bf16=False):
    """src: (B, S_src, H), tgt: (B, S_tgt, H), weight: (H, H) -> (B, S_src, S_tgt).

    compute_in_bf16: optionally run both MXU matmuls with bf16 operands
    (f32 accumulation) for f32 callers who want full MXU rate.
    """
    B, S_src, H = src.shape
    B2, S_tgt, H2 = tgt.shape
    assert B == B2 and H == H2 and weight.shape == (H, H)

    out_dtype = src.dtype

    if compute_in_bf16:
        src = src.astype(jnp.bfloat16)

    # Harmonize dtypes: both operands of each MXU matmul must match for the
    # fast bf16 path (mixed f32-weight / bf16-activation silently takes a
    # slower, differently-rounded path).
    tgt = tgt.astype(src.dtype)
    # Pre-transpose the torch (out, in) weight ONCE in the wrapper so the
    # first dot_general contracts (M,K)x(K,N) directly.
    weight_t = jnp.transpose(weight.astype(src.dtype))

    in_bytes = jnp.dtype(src.dtype).itemsize
    out_bytes = jnp.dtype(out_dtype).itemsize
    interm_dtype = jnp.bfloat16 if src.dtype == jnp.bfloat16 else jnp.float32
    interm_bytes = jnp.dtype(interm_dtype).itemsize

    # ---------------- tile selection ----------------
    S_src_8 = _round_up(S_src, 8)       # sublane granularity
    S_tgt_128 = _round_up(S_tgt, 128)   # lane-dense output stores

    # tgt/output tile width: lane-dense multiple of 128, chosen to minimize
    # padded extent (arithmetic intensity is ~independent of tn).
    tn_target = max(128, _round_up(min(tn, S_tgt_128), 128))
    best_tn, best_pad = 128, None
    for c in range(tn_target // 128, 0, -1):
        cand = c * 128
        pad = _round_up(S_tgt_128, cand) - S_tgt_128
        if best_pad is None or pad < best_pad:
            best_tn, best_pad = cand, pad
    tn = best_tn
    n_j = _round_up(S_tgt_128, tn) // tn
    S_tgt_p = n_j * tn

    # Generation-aware VMEM budget (85% of per-TC capacity: ~54 MiB on v7x,
    # ~108 MiB on v5e/v6e) with headroom for Mosaic internal scratch.
    vmem_cap = _vmem_capacity_bytes()
    vmem_budget = int(0.85 * vmem_cap)

    def vmem_est(tm_, tn_):
        return int(1.25 * (
            2 * tm_ * H * in_bytes         # src tile, double-buffered
            + 2 * tn_ * H * in_bytes       # tgt tile, double-buffered
            + 2 * tm_ * tn_ * out_bytes    # out tile, double-buffered
            + H * H * in_bytes             # weight, single-buffered (Buffered(1))
            + tm_ * H * interm_bytes       # src_lin scratch
        )) + (1 << 20)

    # src tile rows: as large as the VMEM budget allows, then balanced across
    # tiles so padding stays within a few sublanes.
    tm = _round_up(max(8, min(tm, S_src_8)), 8)
    while vmem_est(tm, tn) > vmem_budget and tm > 8:
        tm = _round_up(max(8, tm // 2), 8)

    n_i = _round_up(S_src_8, tm) // tm
    if B * n_i < 2 and S_src_8 >= 16:
        n_i = 2  # give both v7x TensorCores a "parallel" slice of work
    tm = _round_up(-(-S_src_8 // n_i), 8)
    S_src_p = n_i * tm

    if S_src_p != S_src:
        src = jnp.pad(src, ((0, 0), (0, S_src_p - S_src), (0, 0)))
    if S_tgt_p != S_tgt:
        tgt = jnp.pad(tgt, ((0, 0), (0, S_tgt_p - S_tgt), (0, 0)))

    grid = (B, n_i, n_j)
    vmem_limit = min(max(vmem_est(tm, tn), 16 << 20), vmem_budget)

    w_bytes = jnp.dtype(weight_t.dtype).itemsize
    flops = (2 * B * n_i * tm * H * H            # linear, once per (b, i)
             + 2 * B * S_src_p * S_tgt_p * H)    # similarity matmul
    bytes_accessed = (B * S_src_p * H * in_bytes           # src, read once
                      + B * n_i * S_tgt_p * H * in_bytes   # tgt, re-read per src tile
                      + H * H * w_bytes                     # weight, resident
                      + B * S_src_p * S_tgt_p * out_bytes)  # output write (padded)
    cost = pl.CostEstimate(flops=flops, transcendentals=0,
                           bytes_accessed=bytes_accessed)

    out = pl.pallas_call(
        _bilinear_sim_kernel,
        out_shape=jax.ShapeDtypeStruct((B, S_src_p, S_tgt_p), out_dtype),
        grid_spec=pltpu.PrefetchScalarGridSpec(
            num_scalar_prefetch=0,
            grid=grid,
            in_specs=[
                pl.BlockSpec((pl.Squeezed(), tm, H), lambda b, i, j: (b, i, 0)),
                pl.BlockSpec((pl.Squeezed(), tn, H), lambda b, i, j: (b, j, 0)),
                # Constant index map -> the weight only ever needs one buffer;
                # single-buffering halves its VMEM footprint.
                pl.BlockSpec((H, H), lambda b, i, j: (0, 0),
                             pipeline_mode=pl.Buffered(1)),
            ],
            out_specs=pl.BlockSpec((pl.Squeezed(), tm, tn),
                                   lambda b, i, j: (b, i, j)),
            scratch_shapes=[pltpu.VMEM((tm, H), interm_dtype)],
        ),
        compiler_params=pltpu.CompilerParams(
            # Batch and src-tile axes are independent (megacore-shardable on
            # v7x); the tgt-tile axis carries the src_lin scratch -> "arbitrary".
            dimension_semantics=("parallel", "parallel", "arbitrary"),
            vmem_limit_bytes=vmem_limit,
        ),
        cost_estimate=cost,
    )(src, tgt, weight_t)

    if S_src_p == S_src and S_tgt_p == S_tgt:
        return out
    return out[:, :S_src, :S_tgt]


if __name__ == "__main__":
    # Small shapes consistent with the module's forward.
    B, S_src, S_tgt, H = 2, 8, 8, 32

    key = jax.random.PRNGKey(0)
    k_src, k_tgt, k_w = jax.random.split(key, 3)

    src = jax.random.normal(k_src, (B, S_src, H), dtype=jnp.float32)
    tgt = jax.random.normal(k_tgt, (B, S_tgt, H), dtype=jnp.float32)
    # Deterministic init of the Linear(H, H, bias=False) weight, torch layout (out, in).
    bound = 1.0 / (H ** 0.5)
    weight = jax.random.uniform(k_w, (H, H), dtype=jnp.float32,
                                minval=-bound, maxval=bound)

    out = bilinear_sim(src, tgt, weight)
    out = jax.block_until_ready(out)

    # Reference check in plain JAX (same math as the PyTorch module).
    ref = jnp.einsum("bsh,bth->bst", src @ weight.T, tgt)
    assert out.shape == (B, S_src, S_tgt)
    assert jnp.allclose(out, ref, atol=1e-4, rtol=1e-4)

    print("KERNEL_OK")
</pallas_src>

<mosaic_0001>
module attributes {stable_mosaic.version = 11 : i64} {
  func.func @_bilinear_sim_kernel(%arg0: i32, %arg1: i32, %arg2: i32, %arg3: memref<1x8x32xf32, #tpu.memory_space<vmem>>, %arg4: memref<1x128x32xf32, #tpu.memory_space<vmem>>, %arg5: memref<32x32xf32, #tpu.memory_space<vmem>>, %arg6: memref<1x8x128xf32, #tpu.memory_space<vmem>>, %arg7: memref<8x32xf32, #tpu.memory_space<vmem>>) attributes {dimension_semantics = [#tpu.dimension_semantics<parallel>, #tpu.dimension_semantics<parallel>, #tpu.dimension_semantics<arbitrary>], iteration_bounds = array<i64: 2, 1, 1>, scalar_prefetch = 0 : i64, scratch_operands = 1 : i64, tpu.core_type = #tpu.core_type<tc>, window_params = [{transform_indices = @transform_0, window_bounds = array<i64: 1, 8, 32>}, {transform_indices = @transform_1, window_bounds = array<i64: 1, 128, 32>}, {pipeline_mode = #tpu.pipeline_mode<synchronous>, transform_indices = @transform_2, window_bounds = array<i64: 32, 32>}, {transform_indices = @transform_3, window_bounds = array<i64: 1, 8, 128>}]} {
    %c0_i32 = arith.constant 0 : i32
    %0 = arith.cmpi eq, %arg2, %c0_i32 : i32
    %1 = arith.extui %0 : i1 to i32
    %c0_i32_0 = arith.constant 0 : i32
    %2 = arith.cmpi ne, %1, %c0_i32_0 : i32
    scf.if %2 {
      %c0_8 = arith.constant 0 : index
      %c0_9 = arith.constant 0 : index
      %c0_10 = arith.constant 0 : index
      %10 = vector.load %arg3[%c0_8, %c0_9, %c0_10] : memref<1x8x32xf32, #tpu.memory_space<vmem>>, vector<1x8x32xf32>
      %11 = vector.shape_cast %10 : vector<1x8x32xf32> to vector<8x32xf32>
      %c0_11 = arith.constant 0 : index
      %c0_12 = arith.constant 0 : index
      %12 = vector.load %arg5[%c0_11, %c0_12] : memref<32x32xf32, #tpu.memory_space<vmem>>, vector<32x32xf32>
      %cst_13 = arith.constant dense<0.000000e+00> : vector<8x32xf32>
      %13 = tpu.matmul %11, %12, %cst_13 {dimension_numbers = #tpu.dot_dimension_numbers<[1], [0], [0], [1], [0, 0, 1, 1], [], []>} : vector<8x32xf32>, vector<32x32xf32>, vector<8x32xf32> -> vector<8x32xf32>
      %c0_14 = arith.constant 0 : index
      %c0_15 = arith.constant 0 : index
      %14 = vector.load %arg7[%c0_14, %c0_15] : memref<8x32xf32, #tpu.memory_space<vmem>>, vector<8x32xf32>
      tpu.vector_store %arg7[%c0_14, %c0_15], %13 {strides = array<i32>} : memref<8x32xf32, #tpu.memory_space<vmem>>, vector<8x32xf32>,
    } else {
    }
    %c0 = arith.constant 0 : index
    %c0_1 = arith.constant 0 : index
    %3 = vector.load %arg7[%c0, %c0_1] : memref<8x32xf32, #tpu.memory_space<vmem>>, vector<8x32xf32>
    %c0_2 = arith.constant 0 : index
    %c0_3 = arith.constant 0 : index
    %c0_4 = arith.constant 0 : index
    %4 = vector.load %arg4[%c0_2, %c0_3, %c0_4] : memref<1x128x32xf32, #tpu.memory_space<vmem>>, vector<1x128x32xf32>
    %5 = vector.shape_cast %4 : vector<1x128x32xf32> to vector<128x32xf32>
    %cst = arith.constant dense<0.000000e+00> : vector<8x128xf32>
    %6 = tpu.matmul %3, %5, %cst {dimension_numbers = #tpu.dot_dimension_numbers<[1], [1], [0], [0], [0, 0, 1, 0], [], []>} : vector<8x32xf32>, vector<128x32xf32>, vector<8x128xf32> -> vector<8x128xf32>
    %c0_5 = arith.constant 0 : index
    %c0_6 = arith.constant 0 : index
    %c0_7 = arith.constant 0 : index
    %7 = vector.load %arg6[%c0_5, %c0_6, %c0_7] : memref<1x8x128xf32, #tpu.memory_space<vmem>>, vector<1x8x128xf32>
    %8 = vector.shape_cast %7 : vector<1x8x128xf32> to vector<8x128xf32>
    %9 = vector.shape_cast %6 : vector<8x128xf32> to vector<1x8x128xf32>
    tpu.vector_store %arg6[%c0_5, %c0_6, %c0_7], %9 {strides = array<i32>} : memref<1x8x128xf32, #tpu.memory_space<vmem>>, vector<1x8x128xf32>,
    return
  }
  func.func @transform_0(%arg0: i32, %arg1: i32, %arg2: i32) -> (i32, i32, i32) {
    %c0_i32 = arith.constant 0 : i32
    %c0_i32_0 = arith.constant 0 : i32
    return %arg0, %arg1, %c0_i32 : i32, i32, i32
  }
  func.func @transform_1(%arg0: i32, %arg1: i32, %arg2: i32) -> (i32, i32, i32) {
    %c0_i32 = arith.constant 0 : i32
    %c0_i32_0 = arith.constant 0 : i32
    return %arg0, %arg2, %c0_i32 : i32, i32, i32
  }
  func.func @transform_2(%arg0: i32, %arg1: i32, %arg2: i32) -> (i32, i32) {
    %c0_i32 = arith.constant 0 : i32
    %c0_i32_0 = arith.constant 0 : i32
    %c0_i32_1 = arith.constant 0 : i32
    return %c0_i32, %c0_i32_0 : i32, i32
  }
  func.func @transform_3(%arg0: i32, %arg1: i32, %arg2: i32) -> (i32, i32, i32) {
    %c0_i32 = arith.constant 0 : i32
    return %arg0, %arg1, %arg2 : i32, i32, i32
  }
}

</mosaic_0001>

<bundles_post_ra>
// kernel: tpu_custom_call.1
= control target key start
LH: loop header
LB: loop body
LE: loop exit
PB: predicated region body
PF: predicated region fallthrough
CT: control target
= control target key end

     0   :  { %8 = vsyncpa [#allocation4], 0  ;;  %s1039_s0 = inlined_call_operand.vmem [shape: f32[2,8,32], index: 0, kind: input, shape index: {}]   ;;  %s1040_s1 = inlined_call_operand.vmem [shape: f32[2,128,32], index: 1, kind: input, shape index: {}]   ;;  %s1041_s2 = inlined_call_operand.vmem [shape: f32[32,32], index: 2, kind: input, shape index: {}]   ;;  %s1042_s3 = inlined_call_operand.hbm [shape: f32[2,8,128], index: 3, kind: output, shape index: {}]  }
   0x1   :  { %10 = vsyncpa [#allocation4 + $0x1], 0  ;;  %s869_s12 = smov 0   ;;  %s871_s13 = smov 0  }
   0x2   :  { %s873_s14 = smov 0   ;;  %s875_s15 = smov 0  }
   0x3   :  { %s877_s16 = smov 0   ;;  %s879_s17 = smov 0  }
   0x4 LB: > { %s569_s18 = sadd.s32 4294967295, %s843_s17   ;;  %s570_s19 = sadd.s32 4294967294, %s843_s17   ;;  %s843_s17 = sphi %s879_s17, %s16_s17   ;;  %s839_s16 = sphi %s877_s16, %s1051_s16   ;;  %s835_s15 = sphi %s875_s15, %s1050_s15   ;;  %s831_s14 = sphi %s873_s14, %s1049_s14   ;;  %s827_s13 = sphi %s871_s13, %s1048_s13   ;;  %s823_s12 = sphi %s869_s12, %s1047_s12  }
   0x5   : > { %s35_s20 = sadd.s32 1, %s839_s16  ;;  %s123_s21 = sadd.s32 1, %s831_s14 }
   0x6   : > { %p37_p0 = scmp.ge.s32.totalorder %s35_s20, 2  ;;  %p133_p1 = scmp.ne.s32.totalorder %s831_s14, %s827_s13 }
   0x7   : > { %p134_p2 = scmp.eq.s32.totalorder %s569_s18, 1  ;;  %p139_p3 = scmp.ne.s32.totalorder %s827_s13, %s823_s12 }
   0x8   : > { %s1053_s20 = smov (%p37_p0, %s35_s20), 0  ;;  %p140_p5 = scmp.eq.s32.totalorder %s570_s19, 1 }
   0x9   : > { %p909_p4 = por %p134_p2, %p133_p1  ;;  %s116_s23 = ssub.s32 %s839_s16, %s1053_s20 }
   0xa   : > { %p573_p6 = scmp.ge.s32.totalorder %s843_s17, 1  ;;  %p121_p7 = scmp.eq.s32.totalorder %s116_s23, 0 }
   0xb   : > { %p916_p8 = por %p140_p5, %p139_p3  ;;  %p184_p9 = scmp.lt.s32.totalorder %s843_s17, 3 }
   0xc   : > { %s922_s25 = scalar_select %p121_p7, %s831_s14, %s123_s21  }
   0xd   : > { %p185_p10 = pnand %p573_p6, %p184_p9 }
   0xe   : > { %v241_v0 = vld [vmem:[%s1041_s2] sm:$0xff] (!%p185_p10)  ;;  %v242_v1 = vld [vmem:[%s1041_s2 + $0x8] sm:$0xff] (!%p185_p10)  ;;  %v243_v2 = vld [vmem:[%s1041_s2 + $0x10] sm:$0xff] (!%p185_p10)  ;;  %v845_v3 = vmov (!%p185_p10), 0.0|0.0   ;;  %vm846_vm0 = vmmov (!%p185_p10), 0   ;;  %v847_v6 = vmov (!%p185_p10), 0.0  }
   0xf   : > { %188 = sbr.rel (%p185_p10) target bundleno = 473 (0x1d9), region = 32  ;;  %669 = vmatprep.subr.bf16.mxu0 (!%p185_p10), %v845_v3  ;;  %v670_v4 = vpack.c.bf16 (!%p185_p10), %v242_v1, %v241_v0  ;;  %v244_v5 = vld [vmem:[%s1041_s2 + $0x18] sm:$0xff] (!%p185_p10)  ;;  %631 = vmatprep.mubr.msk.f32.mxu0 (!%p185_p10), %vm846_vm0, %v847_v6  ;;  %p219_p11 = scmp.lt.s32.totalorder (!%p185_p10), %s835_s15, 1  ;;  %vm245_vm1 = vcmask (!%p185_p10), 261120  }
  0x10   : > { %675 = vmatprep.subr.bf16.mxu1 (!%p185_p10), %v845_v3  ;;  %666 = vmatprep.mubr.msk.f32.mxu1 (!%p185_p10), %vm846_vm0, %v847_v6  ;;  %v673_v7 = vpack.c.bf16 (!%p185_p10), %v244_v5, %v243_v2  ;;  %vm948_vm2 = vmpackc.low (!%p185_p10), %vm245_vm1, %vm245_vm1  ;;  %s216_s26 = sand.u32 (!%p185_p10), 1, %s827_s13   ;;  %s597_s30 = sshll.u32 (!%p185_p10), %s835_s15, 7 }
  0x11   : > { %671 = vmatpush3.bf16.msra.mxu0 (!%p185_p10), %v670_v4  ;;  %s574_s27 = sshll.u32 (!%p185_p10), %s216_s26, 3  ;;  %s994_s6 = scalar_lea.hbm (!%p185_p10), %s1042_s3, %s597_s30 }
  0x12   : > { %672 = vmatprep.subr.bf16.mxu0 (!%p185_p10), %v845_v3  ;;  %s218_s28 = scalar_lea.vmem (!%p185_p10), [#allocation3], %s574_s27 }
  0x13   : > { %s476_s29 = sshll.u32 (!%p185_p10), %s218_s28, 4  ;;  %s989_s29 = int_to_ptr.vmem [resolvable:$true] %s476_s29 }
  0x15   : > { %674 = vmatpush3.bf16.msra.mxu0 (!%p185_p10), %v673_v7 }
  0x16   : > { %s220_s7 = scalar_select %p219_p11, %s835_s15, 1 }
  0x17   : > { %s848_s15 = smov [#allocation3]  }
  0x18   : > { %s575_s8 = sshll.u32 %s220_s7, 3  ;;  %s600_s9 = sshll.u32 %s220_s7, 7 }
  0x19   : > { %s225_s18 = scalar_lea.vmem %s1039_s0, %s575_s8  ;;  %s944_s23 = scalar_lea.vmem %s1040_s1, %s600_s9 }
  0x1a   : > { %v240_v9 = vld [vmem:[%s225_s18] sm:$0xff]  ;;  %v322_v11 = vld [vmem:[%s944_s23 + $0x8] sm:$0xff]  ;;  %v323_v13 = vld [vmem:[%s944_s23 + $0x10] sm:$0xff]  ;;  %s461_s7 = scalar_lea.sflag [#allocation4], %s216_s26  ;;  %s765_s8 = scalar_lea.vmem %s989_s29, 128 }
  0x1b   : > { %v321_v10 = vld [vmem:[%s944_s23] sm:$0xff]  ;;  %632 = vmatmul.mubr.msk.f32.vlgmr.msra.gmra.mrb[0].mxu0 %vm245_vm1, %v240_v9  ;;  %v324_v14 = vld [vmem:[%s944_s23 + $0x18] sm:$0xff]  ;;  %v326_v17 = vld [vmem:[%s944_s23 + $0x28] sm:$0xff]  ;;  %p766_p12 = scmp.ne.s32.totalorder %s989_s29, %s765_s8  ;;  %s769_s9 = sshll.u32 %s848_s15, 4  ;;  %s770_s9 = int_to_ptr.vmem [resolvable:$false] %s769_s9 }
  0x1c   : > { %v676_v12 = vpack.c.bf16 %v322_v11, %v321_v10  ;;  %v680_v15 = vpack.c.bf16 %v324_v14, %v323_v13  ;;  %v325_v16 = vld [vmem:[%s944_s23 + $0x20] sm:$0xff]  ;;  %v327_v19 = vld [vmem:[%s944_s23 + $0x30] sm:$0xff]  ;;  %v328_v20 = vld [vmem:[%s944_s23 + $0x38] sm:$0xff]  ;;  %s771_s10 = scalar_lea.vmem %s770_s9, 256  ;;  %p772_p1 = scmp.lt.s32.totalorder %s989_s29, %s770_s9 }
  0x1d   : > { %v684_v18 = vpack.c.bf16 %v326_v17, %v325_v16  ;;  %v688_v21 = vpack.c.bf16 %v328_v20, %v327_v19  ;;  %v329_v22 = vld [vmem:[%s944_s23 + $0x40] sm:$0xff]  ;;  %v330_v23 = vld [vmem:[%s944_s23 + $0x48] sm:$0xff]  ;;  %v331_v25 = vld [vmem:[%s944_s23 + $0x50] sm:$0xff]  ;;  %p767_p13 = pnand %p766_p12, %p909_p4  ;;  %p773_p2 = scmp.lt.s32.totalorder %s771_s10, %s765_s8 }
  0x1e   : > { %678 = vmatpush3.bf16.xpose.msk.msra.mxu1 %vm948_vm2, %v676_v12  ;;  %v692_v24 = vpack.c.bf16 %v330_v23, %v329_v22  ;;  %v332_v26 = vld [vmem:[%s944_s23 + $0x58] sm:$0xff]  ;;  %v333_v28 = vld [vmem:[%s944_s23 + $0x60] sm:$0xff]  ;;  %v334_v29 = vld [vmem:[%s944_s23 + $0x68] sm:$0xff] }
  0x1f   : > { %679 = vmatprep.subr.bf16.mxu1 %v845_v3  ;;  %v696_v27 = vpack.c.bf16 %v332_v26, %v331_v25  ;;  %v700_v30 = vpack.c.bf16 %v334_v29, %v333_v28  ;;  %v335_v31 = vld [vmem:[%s944_s23 + $0x70] sm:$0xff]  ;;  %v336_v32 = vld [vmem:[%s944_s23 + $0x78] sm:$0xff]  ;;  %p768_p0 = pneg %p767_p13  ;;  %p774_p3 = por %p773_p2, %p772_p1 }
  0x20   : > { %v704_v33 = vpack.c.bf16 %v336_v32, %v335_v31 }
  0x21   : > { %p775_p5 = pnand %p774_p3, %p768_p0 }
  0x26   : > { %682 = vmatpush3.bf16.xpose.msk.msra.mxu1 %vm948_vm2, %v680_v15 }
  0x27   : > { %683 = vmatprep.subr.bf16.mxu1 %v845_v3 }
  0x2e   : > { %686 = vmatpush3.bf16.xpose.msk.msra.mxu1 %vm948_vm2, %v684_v18 }
  0x2f   : > { %687 = vmatprep.subr.bf16.mxu1 %v845_v3 }
  0x36   : > { %690 = vmatpush3.bf16.xpose.msk.msra.mxu1 %vm948_vm2, %v688_v21 }
  0x37   : > { %691 = vmatprep.subr.bf16.mxu1 %v845_v3 }
  0x3e   : > { %694 = vmatpush3.bf16.xpose.msk.msra.mxu1 %vm948_vm2, %v692_v24 }
  0x3f   : > { %695 = vmatprep.subr.bf16.mxu1 %v845_v3 }
  0x46   : > { %698 = vmatpush3.bf16.xpose.msk.msra.mxu1 %vm948_vm2, %v696_v27 }
  0x47   : > { %699 = vmatprep.subr.bf16.mxu1 %v845_v3 }
  0x4e   : > { %702 = vmatpush3.bf16.xpose.msk.msra.mxu1 %vm948_vm2, %v700_v30 }
  0x4f   : > { %703 = vmatprep.subr.bf16.mxu1 %v845_v3 }
  0x56   : > { %706 = vmatpush3.bf16.xpose.msk.msra.mxu1 %vm948_vm2, %v704_v33 }
  0xee   : > { %v315_v34 = vpop.f32.mrb[0].mxu0 }
  0xef   : > { %319 = vst.msk [vmem:[#allocation2] sm:$0xff] %vm245_vm1, %v315_v34  ;;  %v633_v35 = vpop.f32.mrb[1].mxu0 }
  0xf6   : > { %v320_v36 = vld [vmem:[#allocation2] sm:$0xff] }
  0xf7   : > { %667 = vmatmul.mubr.msk.f32.vlgmr.msra.gmra.mrb[0].mxu1 %vm245_vm1, %v320_v36 }
 0x1ca   : > { %v455_v37 = vpop.f32.mrb[0].mxu1 }
 0x1cb   : > { %459 = vst [vmem:[%s218_s28] sm:$0xff] %v455_v37  ;;  %v668_v38 = vpop.f32.mrb[1].mxu1 }
 0x1cc   : > { %778 = shalt.err (!%p775_p5)
}
 0x1cd   : > { %s779_s11 = scalar_lea.hbm %s994_s6, 128  ;;  %s783_s21 = scalar_lea.hbm %s1042_s3, 256 }
 0x1ce   : > { %p780_p6 = scmp.ne.s32.totalorder %s994_s6, %s779_s11  ;;  %p784_p10 = scmp.lt.u32.totalorder %s994_s6, %s1042_s3 }
 0x1cf   : > { %p785_p11 = scmp.lt.u32.totalorder %s783_s21, %s779_s11  ;;  %p787_p13 = scmp.lt.u32.totalorder %s779_s11, %s994_s6 }
 0x1d0   : > { %p781_p7 = pnand %p780_p6, %p909_p4 }
 0x1d1   : > { %p786_p12 = por %p785_p11, %p784_p10 }
 0x1d2   : > { %p782_p9 = pneg %p781_p7 }
 0x1d3   : > { %p788_p0 = por %p787_p13, %p786_p12 }
 0x1d5   : > { %p789_p1 = pnand %p788_p0, %p782_p9 }
 0x1d7   : > { %792 = shalt.err (!%p789_p1)
}
 0x1d8   : > { %707 = dma.vmem_to_hbm [thread:$0]  (%p909_p4), %s989_s29, 128, %s994_s6, %s461_s7  }
 0x1d9 PF: > { %p713_p2 = scmp.ge.s32.totalorder %s843_s17, 2  ;;  %s488_s27 = sand.u32 1, %s823_s12  }
 0x1da   : > { %s489_s28 = scalar_lea.sflag [#allocation4], %s488_s27 }
 0x1db   : > { %p710_p3 = pnand %p713_p2, %p916_p8 }
 0x1dd   : > { %818 = dma.done.wait (!%p710_p3), %s489_s28, 128  }
 0x1de   : > { %820 = vsyncadd (!%p710_p3), %s489_s28, 4294967168  ;;  %s16_s17 = sadd.s32 1, %s843_s17   ;;  %s1047_s12 = smov %s827_s13 }
 0x1df   : > { %p13_p5 = scmp.ge.s32.totalorder %s16_s17, 4   ;;  %s1048_s13 = smov %s831_s14 }
 0x1e0   : > { %s1049_s14 = smov %s922_s25  ;;  %s1050_s15 = smov %s839_s16 }
 0x1e1   : > { %s1051_s16 = smov %s1053_s20  ;;  %15 = sbr.rel (!%p13_p5) target bundleno = 4 (0x4), region = 74 }
 0x1e8   :  { %494 = vsyncpa [#allocation4], 1 }
 0x1e9   :  { %496 = vsyncpa [#allocation4 + $0x1], 1 }

</bundles_post_ra>
